<compile_context>
chip_gen: v7x
topology: tpu7x:2x2x1
jax: 0.10.0
libtpu: 0.0.40
codegen_flags: <defaults>
</compile_context>

<pallas_src>
import functools

import jax
import jax.numpy as jnp
from jax.experimental import pallas as pl
from jax.experimental.pallas import tpu as pltpu

LN_EPS = 1e-5  # PyTorch nn.LayerNorm default


def _rup(x, m):
    return (x + m - 1) // m * m


def _pack_layout(num_inputs, hidden, action_space):
    """Row offsets of each parameter segment inside the packed (rows, H) buffer."""
    off = {}
    cur = 0

    def seg(name, rows):
        nonlocal cur
        off[name] = cur
        cur += _rup(rows, 8)          # keep every segment start 8-row aligned

    seg("w1", num_inputs)             # (I, H)
    seg("w2x", hidden)                # (H, H)   hidden part of linear2
    seg("w2a", action_space)          # (A, H)   action part of linear2
    seg("w3", hidden)                 # (H, H)
    seg("vec", 9)                     # b1,g1,be1,b2,g2,be2,b3,g3,be3  (each 1 row)
    seg("hw", hidden)                 # fused heads weight: cols 0,1 = wq,wv
    seg("hb", 1)                      # fused heads bias:   cols 0,1 = bq,bv
    return off, cur


def pack_params(params, num_inputs, hidden, action_space):
    """Pack all Critic parameters into one (rows, H) f32 buffer (one DMA)."""
    I, H, A = num_inputs, hidden, action_space
    off, rows = _pack_layout(I, H, A)
    buf = jnp.zeros((rows, H), jnp.float32)

    buf = buf.at[off["w1"]: off["w1"] + I, :].set(params["w1"])
    buf = buf.at[off["w2x"]: off["w2x"] + H, :].set(params["w2x"])
    buf = buf.at[off["w2a"]: off["w2a"] + A, :].set(params["w2a"])
    buf = buf.at[off["w3"]: off["w3"] + H, :].set(params["w3"])

    vecs = jnp.concatenate(
        [params[k] for k in ("b1", "g1", "be1", "b2", "g2", "be2", "b3", "g3", "be3")],
        axis=0,
    )  # (9, H)
    buf = buf.at[off["vec"]: off["vec"] + 9, :].set(vecs)

    head_w = jnp.concatenate([params["wq"], params["wv"]], axis=1)  # (H, 2)
    head_b = jnp.concatenate([params["bq"], params["bv"]], axis=1)  # (1, 2)
    buf = buf.at[off["hw"]: off["hw"] + H, 0:2].set(head_w)
    buf = buf.at[off["hb"]: off["hb"] + 1, 0:2].set(head_b)
    return buf


def _layernorm(h, gamma, beta):
    mean = jnp.mean(h, axis=-1, keepdims=True)
    var = jnp.mean((h - mean) ** 2, axis=-1, keepdims=True)
    scale = jax.lax.rsqrt(var + LN_EPS) * gamma   # fold gamma into the rsqrt scale
    return (h - mean) * scale + beta


def critic_kernel(x_ref, a_ref, p_ref, out_ref, *, I, H, A, off):
    x = x_ref[...]                                   # (bm, I)
    a = a_ref[...]                                   # (bm, A)
    P = p_ref

    # Static slices into the packed parameter block (free views into VMEM).
    w1 = P[off["w1"]: off["w1"] + I, :]
    w2x = P[off["w2x"]: off["w2x"] + H, :]
    w2a = P[off["w2a"]: off["w2a"] + A, :]
    w3 = P[off["w3"]: off["w3"] + H, :]
    ov = off["vec"]
    b1, g1, be1 = P[ov + 0:ov + 1, :], P[ov + 1:ov + 2, :], P[ov + 2:ov + 3, :]
    b2, g2, be2 = P[ov + 3:ov + 4, :], P[ov + 4:ov + 5, :], P[ov + 5:ov + 6, :]
    b3, g3, be3 = P[ov + 6:ov + 7, :], P[ov + 7:ov + 8, :], P[ov + 8:ov + 9, :]
    hw = P[off["hw"]: off["hw"] + H, 0:2]            # fused (H, 2) head weight
    hb = P[off["hb"]: off["hb"] + 1, 0:2]            # fused (1, 2) head bias

    # linear1 -> ln1 -> relu
    h = jnp.dot(x, w1, preferred_element_type=jnp.float32) + b1
    h = jnp.maximum(_layernorm(h, g1, be1), 0.0)

    # cat((h, actions), 1) -> linear2, expressed as split matmuls (no concat)
    h2 = (
        jnp.dot(h, w2x, preferred_element_type=jnp.float32)
        + jnp.dot(a, w2a, preferred_element_type=jnp.float32)
        + b2
    )
    h2 = jnp.maximum(_layernorm(h2, g2, be2), 0.0)

    # dropout: eval mode (training=False) -> identity

    # linear3 -> ln3 -> relu
    h3 = jnp.dot(h2, w3, preferred_element_type=jnp.float32) + b3
    h3 = jnp.maximum(_layernorm(h3, g3, be3), 0.0)

    # fused heads: one matmul, single (bm, 2) output; ReLU only on column 1 (R)
    qr = jnp.dot(h3, hw, preferred_element_type=jnp.float32) + hb
    col = jax.lax.broadcasted_iota(jnp.int32, qr.shape, 1)
    out_ref[...] = jnp.where(col == 0, qr, jnp.maximum(qr, 0.0))


def critic_forward(inputs, actions, packed_params, *, num_inputs, hidden,
                   action_space, block_b=256):
    """Critic forward in one Pallas kernel with a 1-D batch grid.

    NOTE: at batch=2 the whole call is launch-overhead bound; the batch grid
    and parallel semantics only pay off once many environments are batched
    into a single call (vmap/stack before calling).
    """
    B = inputs.shape[0]
    I, H, A = num_inputs, hidden, action_space
    off, rows = _pack_layout(I, H, A)

    bm = min(block_b, _rup(B, 8))
    Bp = _rup(B, bm)
    if Bp != B:
        inputs = jnp.pad(inputs, ((0, Bp - B), (0, 0)))
        actions = jnp.pad(actions, ((0, Bp - B), (0, 0)))

    kernel = functools.partial(critic_kernel, I=I, H=H, A=A, off=off)

    flops = 2 * Bp * (I * H + (H + A) * H + H * H + 2 * H)
    bytes_accessed = 4 * (Bp * (I + A + 2) + rows * H)
    cost = pl.CostEstimate(flops=flops, transcendentals=3 * Bp,
                           bytes_accessed=bytes_accessed)

    qr = pl.pallas_call(
        kernel,
        out_shape=jax.ShapeDtypeStruct((Bp, 2), jnp.float32),
        grid_spec=pltpu.PrefetchScalarGridSpec(
            num_scalar_prefetch=0,
            grid=(Bp // bm,),
            in_specs=[
                pl.BlockSpec((bm, I), lambda i: (i, 0)),     # activations tiled
                pl.BlockSpec((bm, A), lambda i: (i, 0)),
                pl.BlockSpec((rows, H), lambda i: (0, 0)),   # weights resident
            ],
            out_specs=pl.BlockSpec((bm, 2), lambda i: (i, 0)),
        ),
        compiler_params=pltpu.CompilerParams(
            dimension_semantics=("parallel",),               # megacore on v7x
            vmem_limit_bytes=8 * 1024 * 1024,
        ),
        cost_estimate=cost,
    )(inputs, actions, packed_params)

    Q = qr[:B, 0:1]
    R = qr[:B, 1:2]
    return Q, R


def init_params(key, num_inputs, hidden_size, action_space):
    """Deterministic synthetic parameters (shapes match the PyTorch module)."""
    ks = jax.random.split(key, 10)

    def lin(k, fan_in, fan_out):
        kw, kb = jax.random.split(k)
        bound = 1.0 / jnp.sqrt(fan_in)
        w = jax.random.uniform(kw, (fan_in, fan_out), jnp.float32, -bound, bound)
        b = jax.random.uniform(kb, (1, fan_out), jnp.float32, -bound, bound)
        return w, b

    H, A = hidden_size, action_space
    w1, b1 = lin(ks[0], num_inputs, H)
    w2, b2 = lin(ks[1], H + A, H)           # split into x-part / action-part
    w3, b3 = lin(ks[2], H, H)
    wq, bq = lin(ks[3], H, 1)
    wv, bv = lin(ks[4], H, 1)

    ones = lambda n: jnp.ones((1, n), jnp.float32)
    zeros = lambda n: jnp.zeros((1, n), jnp.float32)

    return {
        "w1": w1, "b1": b1, "g1": ones(H), "be1": zeros(H),
        "w2x": w2[:H, :], "w2a": w2[H:, :], "b2": b2, "g2": ones(H), "be2": zeros(H),
        "w3": w3, "b3": b3, "g3": ones(H), "be3": zeros(H),
        "wq": wq, "bq": bq, "wv": wv, "bv": bv,
    }


def reference_forward(inputs, actions, params):
    """Pure-JAX reference mirroring the PyTorch forward (eval mode)."""
    def ln(h, g, b):
        m = jnp.mean(h, -1, keepdims=True)
        v = jnp.mean((h - m) ** 2, -1, keepdims=True)
        return (h - m) / jnp.sqrt(v + LN_EPS) * g + b

    x = jax.nn.relu(ln(inputs @ params["w1"] + params["b1"], params["g1"], params["be1"]))
    x = jnp.concatenate([x, actions], axis=1)
    w2 = jnp.concatenate([params["w2x"], params["w2a"]], axis=0)
    x = jax.nn.relu(ln(x @ w2 + params["b2"], params["g2"], params["be2"]))
    x = jax.nn.relu(ln(x @ params["w3"] + params["b3"], params["g3"], params["be3"]))
    Q = x @ params["wq"] + params["bq"]
    R = jax.nn.relu(x @ params["wv"] + params["bv"])
    return Q, R


if __name__ == "__main__":
    key = jax.random.PRNGKey(0)
    k_param, k_x, k_a = jax.random.split(key, 3)

    batch = 2
    num_inputs = 16
    hidden_size = 32
    action_space = 4

    params = init_params(k_param, num_inputs, hidden_size, action_space)
    packed = pack_params(params, num_inputs, hidden_size, action_space)
    inputs = jax.random.normal(k_x, (batch, num_inputs), jnp.float32)
    actions = jax.random.normal(k_a, (batch, action_space), jnp.float32)

    Q, R = critic_forward(inputs, actions, packed, num_inputs=num_inputs,
                          hidden=hidden_size, action_space=action_space)
    jax.block_until_ready((Q, R))

    Q_ref, R_ref = reference_forward(inputs, actions, params)
    assert Q.shape == (batch, 1) and R.shape == (batch, 1)
    assert jnp.allclose(Q, Q_ref, atol=1e-4, rtol=1e-4)
    assert jnp.allclose(R, R_ref, atol=1e-4, rtol=1e-4)
    assert jnp.all(R >= 0.0)

    print("KERNEL_OK")
</pallas_src>

<mosaic_0001>
module attributes {stable_mosaic.version = 11 : i64} {
  func.func @critic_kernel(%arg0: i32, %arg1: memref<8x16xf32, #tpu.memory_space<vmem>>, %arg2: memref<8x4xf32, #tpu.memory_space<vmem>>, %arg3: memref<144x32xf32, #tpu.memory_space<vmem>>, %arg4: memref<8x2xf32, #tpu.memory_space<vmem>>) attributes {dimension_semantics = [#tpu.dimension_semantics<parallel>], iteration_bounds = array<i64: 1>, scalar_prefetch = 0 : i64, scratch_operands = 0 : i64, tpu.core_type = #tpu.core_type<tc>, window_params = [{transform_indices = @transform_0, window_bounds = array<i64: 8, 16>}, {transform_indices = @transform_1, window_bounds = array<i64: 8, 4>}, {pipeline_mode = #tpu.pipeline_mode<synchronous>, transform_indices = @transform_2, window_bounds = array<i64: 144, 32>}, {transform_indices = @transform_3, window_bounds = array<i64: 8, 2>}]} {
    %c0 = arith.constant 0 : index
    %c0_0 = arith.constant 0 : index
    %0 = vector.load %arg1[%c0, %c0_0] : memref<8x16xf32, #tpu.memory_space<vmem>>, vector<8x16xf32>
    %c0_1 = arith.constant 0 : index
    %c0_2 = arith.constant 0 : index
    %1 = vector.load %arg2[%c0_1, %c0_2] : memref<8x4xf32, #tpu.memory_space<vmem>>, vector<8x4xf32>
    %c0_3 = arith.constant 0 : index
    %c0_4 = arith.constant 0 : index
    %2 = vector.load %arg3[%c0_3, %c0_4] : memref<144x32xf32, #tpu.memory_space<vmem>>, vector<16x32xf32>
    %c16 = arith.constant 16 : index
    %c0_5 = arith.constant 0 : index
    %3 = vector.load %arg3[%c16, %c0_5] : memref<144x32xf32, #tpu.memory_space<vmem>>, vector<32x32xf32>
    %c48 = arith.constant 48 : index
    %c0_6 = arith.constant 0 : index
    %4 = vector.load %arg3[%c48, %c0_6] : memref<144x32xf32, #tpu.memory_space<vmem>>, vector<4x32xf32>
    %c56 = arith.constant 56 : index
    %c0_7 = arith.constant 0 : index
    %5 = vector.load %arg3[%c56, %c0_7] : memref<144x32xf32, #tpu.memory_space<vmem>>, vector<32x32xf32>
    %c88 = arith.constant 88 : index
    %c0_8 = arith.constant 0 : index
    %6 = vector.load %arg3[%c88, %c0_8] : memref<144x32xf32, #tpu.memory_space<vmem>>, vector<1x32xf32>
    %c89 = arith.constant 89 : index
    %c0_9 = arith.constant 0 : index
    %7 = vector.load %arg3[%c89, %c0_9] : memref<144x32xf32, #tpu.memory_space<vmem>>, vector<1x32xf32>
    %c90 = arith.constant 90 : index
    %c0_10 = arith.constant 0 : index
    %8 = vector.load %arg3[%c90, %c0_10] : memref<144x32xf32, #tpu.memory_space<vmem>>, vector<1x32xf32>
    %c91 = arith.constant 91 : index
    %c0_11 = arith.constant 0 : index
    %9 = vector.load %arg3[%c91, %c0_11] : memref<144x32xf32, #tpu.memory_space<vmem>>, vector<1x32xf32>
    %c92 = arith.constant 92 : index
    %c0_12 = arith.constant 0 : index
    %10 = vector.load %arg3[%c92, %c0_12] : memref<144x32xf32, #tpu.memory_space<vmem>>, vector<1x32xf32>
    %c93 = arith.constant 93 : index
    %c0_13 = arith.constant 0 : index
    %11 = vector.load %arg3[%c93, %c0_13] : memref<144x32xf32, #tpu.memory_space<vmem>>, vector<1x32xf32>
    %c94 = arith.constant 94 : index
    %c0_14 = arith.constant 0 : index
    %12 = vector.load %arg3[%c94, %c0_14] : memref<144x32xf32, #tpu.memory_space<vmem>>, vector<1x32xf32>
    %c95 = arith.constant 95 : index
    %c0_15 = arith.constant 0 : index
    %13 = vector.load %arg3[%c95, %c0_15] : memref<144x32xf32, #tpu.memory_space<vmem>>, vector<1x32xf32>
    %c96 = arith.constant 96 : index
    %c0_16 = arith.constant 0 : index
    %14 = vector.load %arg3[%c96, %c0_16] : memref<144x32xf32, #tpu.memory_space<vmem>>, vector<1x32xf32>
    %c104 = arith.constant 104 : index
    %c0_17 = arith.constant 0 : index
    %15 = vector.load %arg3[%c104, %c0_17] : memref<144x32xf32, #tpu.memory_space<vmem>>, vector<32x2xf32>
    %c136 = arith.constant 136 : index
    %c0_18 = arith.constant 0 : index
    %16 = vector.load %arg3[%c136, %c0_18] : memref<144x32xf32, #tpu.memory_space<vmem>>, vector<1x2xf32>
    %cst = arith.constant dense<0.000000e+00> : vector<8x32xf32>
    %17 = tpu.matmul %0, %2, %cst {dimension_numbers = #tpu.dot_dimension_numbers<[1], [0], [0], [1], [0, 0, 1, 1], [], []>} : vector<8x16xf32>, vector<16x32xf32>, vector<8x32xf32> -> vector<8x32xf32>
    %18 = vector.broadcast %6 : vector<1x32xf32> to vector<8x32xf32>
    %19 = arith.addf %17, %18 : vector<8x32xf32>
    %cst_19 = arith.constant dense<0.000000e+00> : vector<8xf32>
    %20 = vector.multi_reduction <add>, %19, %cst_19 [1] : vector<8x32xf32> to vector<8xf32>
    %21 = vector.shape_cast %20 : vector<8xf32> to vector<8x1xf32>
    %cst_20 = arith.constant 3.200000e+01 : f32
    %22 = vector.broadcast %cst_20 : f32 to vector<8x1xf32>
    %23 = arith.divf %21, %22 : vector<8x1xf32>
    %24 = vector.broadcast %23 : vector<8x1xf32> to vector<8x32xf32>
    %25 = arith.subf %19, %24 : vector<8x32xf32>
    %26 = arith.mulf %25, %25 : vector<8x32xf32>
    %cst_21 = arith.constant dense<0.000000e+00> : vector<8xf32>
    %27 = vector.multi_reduction <add>, %26, %cst_21 [1] : vector<8x32xf32> to vector<8xf32>
    %28 = vector.shape_cast %27 : vector<8xf32> to vector<8x1xf32>
    %cst_22 = arith.constant 3.200000e+01 : f32
    %29 = vector.broadcast %cst_22 : f32 to vector<8x1xf32>
    %30 = arith.divf %28, %29 : vector<8x1xf32>
    %cst_23 = arith.constant 9.99999974E-6 : f32
    %31 = vector.broadcast %cst_23 : f32 to vector<8x1xf32>
    %32 = arith.addf %30, %31 : vector<8x1xf32>
    %33 = math.rsqrt %32 : vector<8x1xf32>
    %34 = vector.broadcast %33 : vector<8x1xf32> to vector<8x32xf32>
    %35 = vector.broadcast %7 : vector<1x32xf32> to vector<8x32xf32>
    %36 = arith.mulf %34, %35 : vector<8x32xf32>
    %37 = vector.broadcast %23 : vector<8x1xf32> to vector<8x32xf32>
    %38 = arith.subf %19, %37 : vector<8x32xf32>
    %39 = arith.mulf %38, %36 : vector<8x32xf32>
    %40 = vector.broadcast %8 : vector<1x32xf32> to vector<8x32xf32>
    %41 = arith.addf %39, %40 : vector<8x32xf32>
    %cst_24 = arith.constant 0.000000e+00 : f32
    %42 = vector.broadcast %cst_24 : f32 to vector<8x32xf32>
    %43 = arith.maximumf %41, %42 : vector<8x32xf32>
    %cst_25 = arith.constant dense<0.000000e+00> : vector<8x32xf32>
    %44 = tpu.matmul %43, %3, %cst_25 {dimension_numbers = #tpu.dot_dimension_numbers<[1], [0], [0], [1], [0, 0, 1, 1], [], []>} : vector<8x32xf32>, vector<32x32xf32>, vector<8x32xf32> -> vector<8x32xf32>
    %cst_26 = arith.constant dense<0.000000e+00> : vector<8x32xf32>
    %45 = tpu.matmul %1, %4, %cst_26 {dimension_numbers = #tpu.dot_dimension_numbers<[1], [0], [0], [1], [0, 0, 1, 1], [], []>} : vector<8x4xf32>, vector<4x32xf32>, vector<8x32xf32> -> vector<8x32xf32>
    %46 = arith.addf %44, %45 : vector<8x32xf32>
    %47 = vector.broadcast %9 : vector<1x32xf32> to vector<8x32xf32>
    %48 = arith.addf %46, %47 : vector<8x32xf32>
    %cst_27 = arith.constant dense<0.000000e+00> : vector<8xf32>
    %49 = vector.multi_reduction <add>, %48, %cst_27 [1] : vector<8x32xf32> to vector<8xf32>
    %50 = vector.shape_cast %49 : vector<8xf32> to vector<8x1xf32>
    %cst_28 = arith.constant 3.200000e+01 : f32
    %51 = vector.broadcast %cst_28 : f32 to vector<8x1xf32>
    %52 = arith.divf %50, %51 : vector<8x1xf32>
    %53 = vector.broadcast %52 : vector<8x1xf32> to vector<8x32xf32>
    %54 = arith.subf %48, %53 : vector<8x32xf32>
    %55 = arith.mulf %54, %54 : vector<8x32xf32>
    %cst_29 = arith.constant dense<0.000000e+00> : vector<8xf32>
    %56 = vector.multi_reduction <add>, %55, %cst_29 [1] : vector<8x32xf32> to vector<8xf32>
    %57 = vector.shape_cast %56 : vector<8xf32> to vector<8x1xf32>
    %cst_30 = arith.constant 3.200000e+01 : f32
    %58 = vector.broadcast %cst_30 : f32 to vector<8x1xf32>
    %59 = arith.divf %57, %58 : vector<8x1xf32>
    %cst_31 = arith.constant 9.99999974E-6 : f32
    %60 = vector.broadcast %cst_31 : f32 to vector<8x1xf32>
    %61 = arith.addf %59, %60 : vector<8x1xf32>
    %62 = math.rsqrt %61 : vector<8x1xf32>
    %63 = vector.broadcast %62 : vector<8x1xf32> to vector<8x32xf32>
    %64 = vector.broadcast %10 : vector<1x32xf32> to vector<8x32xf32>
    %65 = arith.mulf %63, %64 : vector<8x32xf32>
    %66 = vector.broadcast %52 : vector<8x1xf32> to vector<8x32xf32>
    %67 = arith.subf %48, %66 : vector<8x32xf32>
    %68 = arith.mulf %67, %65 : vector<8x32xf32>
    %69 = vector.broadcast %11 : vector<1x32xf32> to vector<8x32xf32>
    %70 = arith.addf %68, %69 : vector<8x32xf32>
    %cst_32 = arith.constant 0.000000e+00 : f32
    %71 = vector.broadcast %cst_32 : f32 to vector<8x32xf32>
    %72 = arith.maximumf %70, %71 : vector<8x32xf32>
    %cst_33 = arith.constant dense<0.000000e+00> : vector<8x32xf32>
    %73 = tpu.matmul %72, %5, %cst_33 {dimension_numbers = #tpu.dot_dimension_numbers<[1], [0], [0], [1], [0, 0, 1, 1], [], []>} : vector<8x32xf32>, vector<32x32xf32>, vector<8x32xf32> -> vector<8x32xf32>
    %74 = vector.broadcast %12 : vector<1x32xf32> to vector<8x32xf32>
    %75 = arith.addf %73, %74 : vector<8x32xf32>
    %cst_34 = arith.constant dense<0.000000e+00> : vector<8xf32>
    %76 = vector.multi_reduction <add>, %75, %cst_34 [1] : vector<8x32xf32> to vector<8xf32>
    %77 = vector.shape_cast %76 : vector<8xf32> to vector<8x1xf32>
    %cst_35 = arith.constant 3.200000e+01 : f32
    %78 = vector.broadcast %cst_35 : f32 to vector<8x1xf32>
    %79 = arith.divf %77, %78 : vector<8x1xf32>
    %80 = vector.broadcast %79 : vector<8x1xf32> to vector<8x32xf32>
    %81 = arith.subf %75, %80 : vector<8x32xf32>
    %82 = arith.mulf %81, %81 : vector<8x32xf32>
    %cst_36 = arith.constant dense<0.000000e+00> : vector<8xf32>
    %83 = vector.multi_reduction <add>, %82, %cst_36 [1] : vector<8x32xf32> to vector<8xf32>
    %84 = vector.shape_cast %83 : vector<8xf32> to vector<8x1xf32>
    %cst_37 = arith.constant 3.200000e+01 : f32
    %85 = vector.broadcast %cst_37 : f32 to vector<8x1xf32>
    %86 = arith.divf %84, %85 : vector<8x1xf32>
    %cst_38 = arith.constant 9.99999974E-6 : f32
    %87 = vector.broadcast %cst_38 : f32 to vector<8x1xf32>
    %88 = arith.addf %86, %87 : vector<8x1xf32>
    %89 = math.rsqrt %88 : vector<8x1xf32>
    %90 = vector.broadcast %89 : vector<8x1xf32> to vector<8x32xf32>
    %91 = vector.broadcast %13 : vector<1x32xf32> to vector<8x32xf32>
    %92 = arith.mulf %90, %91 : vector<8x32xf32>
    %93 = vector.broadcast %79 : vector<8x1xf32> to vector<8x32xf32>
    %94 = arith.subf %75, %93 : vector<8x32xf32>
    %95 = arith.mulf %94, %92 : vector<8x32xf32>
    %96 = vector.broadcast %14 : vector<1x32xf32> to vector<8x32xf32>
    %97 = arith.addf %95, %96 : vector<8x32xf32>
    %cst_39 = arith.constant 0.000000e+00 : f32
    %98 = vector.broadcast %cst_39 : f32 to vector<8x32xf32>
    %99 = arith.maximumf %97, %98 : vector<8x32xf32>
    %cst_40 = arith.constant dense<0.000000e+00> : vector<8x2xf32>
    %100 = tpu.matmul %99, %15, %cst_40 {dimension_numbers = #tpu.dot_dimension_numbers<[1], [0], [0], [1], [0, 0, 1, 1], [], []>} : vector<8x32xf32>, vector<32x2xf32>, vector<8x2xf32> -> vector<8x2xf32>
    %101 = vector.broadcast %16 : vector<1x2xf32> to vector<8x2xf32>
    %102 = arith.addf %100, %101 : vector<8x2xf32>
    %103 = tpu.iota {dimensions = array<i32: 1>} : vector<8x2xi32>
    %c0_i32 = arith.constant 0 : i32
    %104 = vector.broadcast %c0_i32 : i32 to vector<8x2xi32>
    %105 = arith.cmpi eq, %103, %104 : vector<8x2xi32>
    %cst_41 = arith.constant 0.000000e+00 : f32
    %106 = vector.broadcast %cst_41 : f32 to vector<8x2xf32>
    %107 = arith.maximumf %102, %106 : vector<8x2xf32>
    %108 = arith.select %105, %102, %107 : vector<8x2xi1>, vector<8x2xf32>
    %c0_42 = arith.constant 0 : index
    %c0_43 = arith.constant 0 : index
    %109 = vector.load %arg4[%c0_42, %c0_43] : memref<8x2xf32, #tpu.memory_space<vmem>>, vector<8x2xf32>
    tpu.vector_store %arg4[%c0_42, %c0_43], %108 {strides = array<i32>} : memref<8x2xf32, #tpu.memory_space<vmem>>, vector<8x2xf32>,
    return
  }
  func.func @transform_0(%arg0: i32) -> (i32, i32) {
    %c0_i32 = arith.constant 0 : i32
    %c0_i32_0 = arith.constant 0 : i32
    return %arg0, %c0_i32 : i32, i32
  }
  func.func @transform_1(%arg0: i32) -> (i32, i32) {
    %c0_i32 = arith.constant 0 : i32
    %c0_i32_0 = arith.constant 0 : i32
    return %arg0, %c0_i32 : i32, i32
  }
  func.func @transform_2(%arg0: i32) -> (i32, i32) {
    %c0_i32 = arith.constant 0 : i32
    %c0_i32_0 = arith.constant 0 : i32
    %c0_i32_1 = arith.constant 0 : i32
    return %c0_i32, %c0_i32_0 : i32, i32
  }
  func.func @transform_3(%arg0: i32) -> (i32, i32) {
    %c0_i32 = arith.constant 0 : i32
    %c0_i32_0 = arith.constant 0 : i32
    return %arg0, %c0_i32 : i32, i32
  }
}

</mosaic_0001>

<bundles_post_ra>
// kernel: tpu_custom_call.1
= control target key start
LH: loop header
LB: loop body
LE: loop exit
PB: predicated region body
PF: predicated region fallthrough
CT: control target
= control target key end

     0   :  { %v625_v0 = vmov 0.0|0.0   ;;  %vm626_vm0 = vmmov 0   ;;  %v627_v3 = vmov 0.0   ;;  %vm45_vm1 = vcmask 130048   ;;  %s753_s2 = inlined_call_operand.vmem [shape: f32[144,32], index: 2, kind: input, shape index: {}]   ;;  %s754_s0 = inlined_call_operand.vmem [shape: f32[8,16], index: 0, kind: input, shape index: {}]   ;;  %s755_s1 = inlined_call_operand.vmem [shape: f32[8,4], index: 1, kind: input, shape index: {}]   ;;  %s756_s3 = inlined_call_operand.vmem [shape: f32[8,2], index: 3, kind: output, shape index: {}]  }
   0x1   :  { %595 = vmatprep.subr.bf16.mxu0 %v625_v0  ;;  %v16_v1 = vld [vmem:[%s753_s2] sm:$0xff]  ;;  %v17_v2 = vld [vmem:[%s753_s2 + $0x8] sm:$0xff]  ;;  %554 = vmatprep.mubr.msk.f32.mxu0 %vm626_vm0, %v627_v3  ;;  %v514_v6 = vld [vmem:[%s753_s2 + $0x58] ss:$0 sm:$0xff]  ;;  %vm119_vm2 = vcmask 261120   ;;  %vm149_vm3 = vcmask 1043456  }
   0x2   :  { %v596_v4 = vpack.c.bf16 %v17_v2, %v16_v1  ;;  %598 = vmatprep.subr.bf16.mxu1 %v625_v0  ;;  %570 = vmatprep.mubr.msk.f32.mxu1 %vm626_vm0, %v627_v3  ;;  %v14_v5 = vld [vmem:[%s754_s0] sm:$0xff]  ;;  %v18_v16 = vld [vmem:[%s753_s2 + $0x10] sm:$0xff]  ;;  %v19_v17 = vld [vmem:[%s753_s2 + $0x18] sm:$0xff]  ;;  %vm145_vm4 = vcmask 31744   ;;  %vm508_vm6 = vcmask 15360  }
   0x3   :  { %v22_v18 = vld [vmem:[%s753_s2 + $0x30] sm:$0xf]  ;;  %v599_v19 = vpack.c.bf16 %v19_v17, %v18_v16  ;;  %v20_v20 = vld [vmem:[%s753_s2 + $0x20] sm:$0xff]  ;;  %v21_v21 = vld [vmem:[%s753_s2 + $0x28] sm:$0xff] }
   0x4   :  { %597 = vmatpush3.bf16.msra.mxu0 %v596_v4  ;;  %v15_v22 = vld [vmem:[%s755_s1] sm:$0xff]  ;;  %v602_v23 = vpack.c.bf16 %v21_v21, %v20_v20  ;;  %v516_v27 = vld [vmem:[%s753_s2 + $0x59] ss:$0 sm:$0xff]  ;;  %v517_v30 = vld [vmem:[%s753_s2 + $0x5a] ss:$0 sm:$0xff] }
   0x5   :  { %557 = vmatprep.subr.mxu0 %v627_v3  ;;  %600 = vmatpush3.bf16.msra.mxu1 %v599_v19  ;;  %v521_v37 = vld [vmem:[%s753_s2 + $0x5b] ss:$0 sm:$0xff]  ;;  %v24_v48 = vld [vmem:[%s753_s2 + $0x40] sm:$0xff]  ;;  %v25_v50 = vld [vmem:[%s753_s2 + $0x48] sm:$0xff] }
   0x6   :  { %601 = vmatprep.subr.bf16.mxu1 %v625_v0  ;;  %v23_v47 = vld [vmem:[%s753_s2 + $0x38] sm:$0xff]  ;;  %v26_v51 = vld [vmem:[%s753_s2 + $0x50] sm:$0xff]  ;;  %v527_v21 = vld [vmem:[%s753_s2 + $0x60] ss:$0 sm:$0xff] }
   0x7   :  { %555 = vmatmul.mubr.msk.f32.vlgmr.msra.gmra.mrb[0].mxu0 %vm45_vm1, %v14_v5  ;;  %v605_v49 = vpack.c.bf16 %v24_v48, %v23_v47  ;;  %v608_v52 = vpack.c.bf16 %v26_v51, %v25_v50  ;;  %v522_v56 = vld [vmem:[%s753_s2 + $0x5c] ss:$0 sm:$0xff]  ;;  %v523_v59 = vld [vmem:[%s753_s2 + $0x5d] ss:$0 sm:$0xff]  ;;  %v524_v63 = vld [vmem:[%s753_s2 + $0x5e] ss:$0 sm:$0xff] }
   0x8   :  { %559 = vmatprep.mubr.msk.f32.mxu0 %vm626_vm0, %v627_v3  ;;  %558 = vmatpush3.msk.msra.mxu0 %vm149_vm3, %v22_v18  ;;  %v526_v19 = vld [vmem:[%s753_s2 + $0x5f] ss:$0 sm:$0xff] }
   0x9   :  { %604 = vmatprep.subr.bf16.mxu0 %v625_v0  ;;  %603 = vmatpush3.bf16.msra.mxu1 %v602_v23 }
   0xa   :  { %610 = vmatprep.subr.bf16.mxu1 %v625_v0 }
   0xb   :  { %560 = vmatmul.mubr.msk.f32.vlgmr.msra.gmra.mrb[2].mxu0 %vm145_vm4, %v15_v22 }
   0xc   :  { %581 = vmatprep.mubr.msk.f32.mxu0 %vm626_vm0, %v627_v3  ;;  %606 = vmatpush3.bf16.msra.mxu0 %v605_v49 }
   0xd   :  { %607 = vmatprep.subr.bf16.mxu0 %v625_v0 }
  0x10   :  { %609 = vmatpush3.bf16.msra.mxu0 %v608_v52 }
  0xda   :  { %v115_v7 = vpop.f32.mrb[0].mxu0 }
  0xdb   :  { %v116_v8 = vadd.f32 %v514_v6, %v115_v7  ;;  %v556_v9 = vpop.f32.mrb[1].mxu0 }
  0xdd   :  { %v120_v10 = vsel %vm119_vm2, %v116_v8, 0.0 }
  0xde   :  { %121 = vadd.xlane.f32.xlu0 %v120_v10  ;;  %v219_v34 = vpop.f32.mrb[2].mxu0  ;;  %v36_v10 = vld [vmem:[%s753_s2 + $0x68] sm:$0xff] }
  0xdf   :  { %v561_v35 = vpop.f32.mrb[3].mxu0 }
 0x16b   :  { %v122_v11 = vpop.xlane.xlu0 %121 }
 0x16c   :  { %v124_v12 = vmul.f32 0.03125, %v122_v11  ;;  %v37_v11 = vld [vmem:[%s753_s2 + $0x70] sm:$0xff] }
 0x16e   :  { %v125_v13 = vsub.f32 %v116_v8, %v124_v12  ;;  %v611_v12 = vpack.c.bf16 %v37_v11, %v36_v10 }
 0x170   :  { %v126_v14 = vmul.f32 %v125_v13, %v125_v13 }
 0x172   :  { %v127_v15 = vsel %vm119_vm2, %v126_v14, 0.0  ;;  %v39_v14 = vld [vmem:[%s753_s2 + $0x80] sm:$0xff] }
 0x173   :  { %128 = vadd.xlane.f32.xlu0 %v127_v15 }
 0x200   :  { %v129_v24 = vpop.xlane.xlu0 %128 }
 0x201   :  { %v130_v25 = vmul.f32 0.03125, %v129_v24 }
 0x203   :  { %v131_v26 = vadd.f32 1e-05, %v130_v25  ;;  %v503_v25 = vlaneseq }
 0x205   :  { %619 = vrsqrt.f32 %v131_v26  ;;  %v528_v26 = vld [vmem:[%s753_s2 + $0x88] ss:$0 sm:$0xff] }
 0x20f   :  { %v620_v28 = vpop.eup %619 }
 0x210   :  { %v137_v29 = vmul.f32 %v620_v28, %v516_v27  ;;  %v504_v27 = vand.u32 127, %v503_v25 }
 0x212   :  { %v138_v31 = vmul.f32 %v137_v29, %v125_v13  ;;  %v38_v13 = vld [vmem:[%s753_s2 + $0x78] sm:$0xff]  ;;  %vm505_vm5 = vcmp.eq.s32.totalorder %v504_v27, 0 }
 0x213   :  { %v614_v15 = vpack.c.bf16 %v39_v14, %v38_v13 }
 0x214   :  { %v143_v32 = vadd.f32 %v517_v30, %v138_v31 }
 0x216   :  { %v144_v33 = vmax.f32 %v143_v32, 0.0 }
 0x218   :  { %571 = vmatmul.mubr.msk.f32.vlgmr.msra.gmra.mrb[0].mxu1 %vm119_vm2, %v144_v33 }
 0x219   :  { %592 = vmatprep.mubr.msk.f32.mxu1 %vm626_vm0, %v627_v3  ;;  %612 = vmatpush3.bf16.msra.mxu1 %v611_v12 }
 0x21a   :  { %613 = vmatprep.subr.bf16.mxu1 %v625_v0 }
 0x21d   :  { %615 = vmatpush3.bf16.msra.mxu1 %v614_v15 }
 0x2eb   :  { %v292_v36 = vpop.f32.mrb[0].mxu1 }
 0x2ec   :  { %v293_v38 = vadd.f32 %v292_v36, %v219_v34  ;;  %v572_v39 = vpop.f32.mrb[1].mxu1 }
 0x2ee   :  { %v300_v40 = vadd.f32 %v521_v37, %v293_v38 }
 0x2f0   :  { %v301_v41 = vsel %vm119_vm2, %v300_v40, 0.0 }
 0x2f1   :  { %302 = vadd.xlane.f32.xlu1 %v301_v41 }
 0x37e   :  { %v303_v42 = vpop.xlane.xlu1 %302 }
 0x37f   :  { %v304_v43 = vmul.f32 0.03125, %v303_v42 }
 0x381   :  { %v305_v44 = vsub.f32 %v300_v40, %v304_v43 }
 0x383   :  { %v306_v45 = vmul.f32 %v305_v44, %v305_v44 }
 0x385   :  { %v307_v46 = vsel %vm119_vm2, %v306_v45, 0.0 }
 0x386   :  { %308 = vadd.xlane.f32.xlu1 %v307_v46 }
 0x413   :  { %v309_v53 = vpop.xlane.xlu1 %308 }
 0x414   :  { %v310_v54 = vmul.f32 0.03125, %v309_v53 }
 0x416   :  { %v311_v55 = vadd.f32 1e-05, %v310_v54 }
 0x418   :  { %621 = vrsqrt.f32 %v311_v55 }
 0x422   :  { %v622_v57 = vpop.eup %621 }
 0x423   :  { %v317_v58 = vmul.f32 %v622_v57, %v522_v56 }
 0x425   :  { %v318_v60 = vmul.f32 %v317_v58, %v305_v44 }
 0x427   :  { %v323_v61 = vadd.f32 %v523_v59, %v318_v60 }
 0x429   :  { %v324_v62 = vmax.f32 %v323_v61, 0.0 }
 0x42b   :  { %582 = vmatmul.mubr.msk.f32.vlgmr.msra.gmra.mrb[4].mxu0 %vm119_vm2, %v324_v62 }
 0x4fe   :  { %v398_v1 = vpop.f32.mrb[4].mxu0 }
 0x4ff   :  { %v399_v2 = vadd.f32 %v524_v63, %v398_v1  ;;  %v583_v3 = vpop.f32.mrb[5].mxu0 }
 0x501   :  { %v402_v4 = vsel %vm119_vm2, %v399_v2, 0.0 }
 0x502   :  { %403 = vadd.xlane.f32.xlu0 %v402_v4 }
 0x58f   :  { %v404_v5 = vpop.xlane.xlu0 %403 }
 0x590   :  { %v405_v6 = vmul.f32 0.03125, %v404_v5 }
 0x592   :  { %v406_v7 = vsub.f32 %v399_v2, %v405_v6 }
 0x594   :  { %v407_v8 = vmul.f32 %v406_v7, %v406_v7 }
 0x596   :  { %v408_v9 = vsel %vm119_vm2, %v407_v8, 0.0 }
 0x597   :  { %409 = vadd.xlane.f32.xlu1 %v408_v9 }
 0x624   :  { %v410_v16 = vpop.xlane.xlu1 %409 }
 0x625   :  { %v411_v17 = vmul.f32 0.03125, %v410_v16 }
 0x627   :  { %v412_v18 = vadd.f32 1e-05, %v411_v17 }
 0x629   :  { %623 = vrsqrt.f32 %v412_v18 }
 0x633   :  { %v624_v20 = vpop.eup %623 }
 0x634   :  { %v418_v0 = vmul.f32 %v624_v20, %v526_v19 }
 0x636   :  { %v419_v22 = vmul.f32 %v418_v0, %v406_v7 }
 0x638   :  { %v424_v23 = vadd.f32 %v527_v21, %v419_v22 }
 0x63a   :  { %v425_v24 = vmax.f32 %v424_v23, 0.0 }
 0x63c   :  { %593 = vmatmul.mubr.msk.f32.vlgmr.msra.gmra.mrb[2].mxu1 %vm119_vm2, %v425_v24 }
 0x70f   :  { %v499_v28 = vpop.f32.mrb[2].mxu1 }
 0x710   :  { %v500_v29 = vadd.f32 %v528_v26, %v499_v28  ;;  %v594_v30 = vpop.f32.mrb[3].mxu1 }
 0x712   :  { %v506_v31 = vmax.f32 %v500_v29, 0.0 }
 0x714   :  { %v507_v32 = vsel %vm505_vm5, %v500_v29, %v506_v31 }
 0x715   :  { %509 = vst.msk [vmem:[%s756_s3] sm:$0xff] %vm508_vm6, %v507_v32 }

</bundles_post_ra>
